<compile_context>
chip_gen: v6e
topology: v6e:2x2x1
jax: 0.10.0
libtpu: 0.0.40
codegen_flags: <defaults>
</compile_context>

<pallas_src>
import jax
import jax.numpy as jnp
import numpy as np
from jax.experimental import pallas as pl
from jax.experimental.pallas import tpu as pltpu


def _round_up(x, m):
    return ((x + m - 1) // m) * m


def _vmem_capacity_bytes():
    try:
        return int(pltpu.get_tpu_info().vmem_capacity_bytes)
    except Exception:
        return 64 * 1024 * 1024          # conservative (v7x-sized) fallback


# ----------------------------------------------------------------------------
# Pallas kernel: bf16 MXU matmul + fused field term + lane-wide f32 accumulator
# ----------------------------------------------------------------------------
def _make_kernel(TN, n_lane_groups, j_resident):
    def kernel(s_ref, j_ref, f_ref, out_ref, acc_ref):
        jblk = pl.program_id(1)

        @pl.when(jblk == 0)
        def _init():
            acc_ref[...] = jnp.zeros_like(acc_ref)

        col = pl.multiple_of(jblk * TN, TN)

        if j_resident:
            # J fully resident in VMEM: slice the current column block
            j_blk = j_ref[:, pl.ds(col, TN)]
        else:
            # J column block streamed by the pipeline
            j_blk = j_ref[...]

        # MXU: (TB, Np) bf16 @ (Np, TN) bf16 -> (TB, TN) f32
        sJ = jnp.dot(s_ref[...], j_blk, preferred_element_type=jnp.float32)

        # column slice of the resident states row block (no 2nd HBM stream)
        s_col = s_ref[:, pl.ds(col, TN)].astype(jnp.float32)

        v = s_col * (sJ + f_ref[...])                      # (TB, TN) f32

        # fold the TN/128 lane groups with VPU adds; cross-lane reduce deferred
        part = v[:, 0:128]
        for g in range(1, n_lane_groups):
            part = part + v[:, g * 128:(g + 1) * 128]
        acc_ref[...] += part

        @pl.when(jblk == pl.num_programs(1) - 1)
        def _finalize():
            out_ref[...] = -jnp.sum(acc_ref[...], axis=-1, keepdims=True)

    return kernel


# ----------------------------------------------------------------------------
# Parameter setup (done once; NOT on the per-call critical path)
# ----------------------------------------------------------------------------
def build_coupling_matrix(couplings, number_of_spins):
    """Scatter the lower-diagonal couplings vector into a symmetric matrix."""
    rows, cols = np.tril_indices(number_of_spins, -1)
    m = jnp.zeros((number_of_spins, number_of_spins), jnp.float32)
    m = m.at[rows, cols].set(couplings.astype(jnp.float32))
    return m + m.T


def prepare_parameters(couplings, fields, number_of_spins):
    """Pad & cast the model parameters once (outside the jitted forward)."""
    N = number_of_spins
    Np = _round_up(max(N, 128), 128)
    if Np > 512:               # keep TN = 512 (MXU / HBM friendly DMA blocks)
        Np = _round_up(Np, 512)
    J = build_coupling_matrix(couplings, N)                          # (N, N) f32
    # bf16 J: MXU-native dtype, halves J bytes; accumulation stays f32.
    J_p = jnp.zeros((Np, Np), jnp.bfloat16).at[:N, :N].set(J.astype(jnp.bfloat16))
    f_p = jnp.zeros((1, Np), jnp.float32).at[0, :N].set(fields.astype(jnp.float32))
    return J_p, f_p


# ----------------------------------------------------------------------------
# Tile / residency selection (trace-time, VMEM-capacity aware)
# ----------------------------------------------------------------------------
def _select_tiles(B, Np, vmem_cap):
    TN = Np if Np <= 512 else 512
    budget = int(vmem_cap * 0.55)

    # Keep the whole padded J VMEM-resident when its (double-buffered) bytes
    # fit in half the budget: J is then read from HBM once total instead of
    # once per batch tile (the dominant HBM stream for large B).
    j_resident = (Np > TN) and (2 * Np * Np * 2) <= budget // 2
    j_bytes = 2 * Np * Np * 2 if j_resident else 2 * Np * TN * 2

    ub = _round_up(B, 16)              # bf16 sublane packing granule
    TB = min(ub, 16)                   # fallback for tiny batches
    for cand in (512, 256, 128, 64, 32, 16):
        if cand > ub:
            continue
        if cand > 128 and _round_up(B, cand) > int(1.3 * B):
            continue                   # avoid gross batch-padding waste
        if B > 256 and (B + cand - 1) // cand < 2:
            continue                   # >= 2 batch tiles -> both v7x TCs busy
        need = (2 * cand * Np * 2      # double-buffered resident states rows
                + j_bytes              # J (resident, or streamed column block)
                + 2 * TN * 4           # streamed fields blocks
                + 3 * cand * TN * 4    # f32 matmul output + elementwise temps
                + cand * 128 * 4       # lane-wide accumulator
                + (1 << 20))           # slack
        if need <= budget:
            TB = cand
            break
    return TB, TN, j_resident


# ----------------------------------------------------------------------------
# Forward pass
# ----------------------------------------------------------------------------
@jax.jit
def spin_glass_hamiltonian(states, coupling_matrix_padded, fields_padded):
    """Ising Hamiltonian for a batch of spin states.

    states:                 (B, N) float32, entries in {-1, +1}
    coupling_matrix_padded: (Np, Np) bfloat16 (from prepare_parameters)
    fields_padded:          (1, Np) float32   (from prepare_parameters)
    returns:                (B,) float32
    """
    B, N = states.shape
    Np = coupling_matrix_padded.shape[0]
    assert coupling_matrix_padded.shape == (Np, Np)
    assert fields_padded.shape == (1, Np)
    assert N <= Np

    vmem_cap = _vmem_capacity_bytes()
    TB, TN, j_resident = _select_tiles(B, Np, vmem_cap)
    Bp = _round_up(B, TB)

    # zero-pad states: padded rows / spin columns contribute exactly zero
    s_p = jnp.zeros((Bp, Np), jnp.bfloat16).at[:B, :N].set(
        states.astype(jnp.bfloat16))

    if j_resident:
        j_spec = pl.BlockSpec((Np, Np), lambda i, j: (0, 0))   # fetched once
    else:
        j_spec = pl.BlockSpec((Np, TN), lambda i, j: (0, j))   # streamed

    kernel = _make_kernel(TN, TN // 128, j_resident)

    out = pl.pallas_call(
        kernel,
        out_shape=jax.ShapeDtypeStruct((Bp, 1), jnp.float32),
        grid_spec=pltpu.PrefetchScalarGridSpec(
            num_scalar_prefetch=0,
            grid=(Bp // TB, Np // TN),
            in_specs=[
                pl.BlockSpec((TB, Np), lambda i, j: (i, 0)),   # states rows (resident over j)
                j_spec,                                        # coupling matrix
                pl.BlockSpec((1, TN), lambda i, j: (0, j)),    # fields column block
            ],
            out_specs=pl.BlockSpec((TB, 1), lambda i, j: (i, 0)),
            scratch_shapes=[pltpu.VMEM((TB, 128), jnp.float32)],
        ),
        compiler_params=pltpu.CompilerParams(
            dimension_semantics=("parallel", "arbitrary"),
            vmem_limit_bytes=min(int(vmem_cap * 0.7), 112 * 1024 * 1024),
        ),
    )(s_p, coupling_matrix_padded, fields_padded)

    return out[:B, 0]


# ----------------------------------------------------------------------------
# Demo / correctness check
# ----------------------------------------------------------------------------
if __name__ == "__main__":

    def run_case(key, number_of_spins, batch):
        k_c, k_f, k_s = jax.random.split(key, 3)
        couplings_sigma = 1.0 / float(number_of_spins)
        n_couplings = number_of_spins * (number_of_spins - 1) // 2
        couplings = couplings_sigma * jax.random.normal(
            k_c, (n_couplings,), jnp.float32)
        fields = (1.0 / couplings_sigma) * jax.random.normal(
            k_f, (number_of_spins,), jnp.float32)

        # parameters padded/cast once (model setup), not per forward call
        J_p, f_p = prepare_parameters(couplings, fields, number_of_spins)

        # spin states in {-1, +1}, same as bernoulli_spins.sample
        bits = jax.random.bernoulli(k_s, 0.5, (batch, number_of_spins))
        states = jnp.where(bits, 1.0, -1.0).astype(jnp.float32)

        h = jax.block_until_ready(spin_glass_hamiltonian(states, J_p, f_p))
        assert h.shape == (batch,)

        # float64 numpy reference of the original einsum semantics
        J64 = np.asarray(build_coupling_matrix(couplings, number_of_spins),
                         dtype=np.float64)
        s64 = np.asarray(states, dtype=np.float64)
        f64 = np.asarray(fields, dtype=np.float64)
        ref = -(np.einsum("bi,ij,bj->b", s64, J64, s64)
                + np.einsum("i,bi->b", f64, s64))
        # bf16 J quantization (~3 significant digits) -> loose tolerance
        np.testing.assert_allclose(np.asarray(h, dtype=np.float64), ref,
                                   rtol=1e-2, atol=1e-1)

    key = jax.random.PRNGKey(0)
    k1, k2, k3 = jax.random.split(key, 3)
    run_case(k1, number_of_spins=16, batch=8)     # tiny demo shape
    run_case(k2, number_of_spins=150, batch=20)   # unaligned -> padding path
    run_case(k3, number_of_spins=600, batch=24)   # multi-column + resident-J path

    print("KERNEL_OK")
</pallas_src>

<mosaic_0001>
module attributes {stable_mosaic.version = 11 : i64} {
  func.func @kernel(%arg0: i32, %arg1: i32, %arg2: memref<16x128xbf16, #tpu.memory_space<vmem>>, %arg3: memref<128x128xbf16, #tpu.memory_space<vmem>>, %arg4: memref<1x128xf32, #tpu.memory_space<vmem>>, %arg5: memref<16x1xf32, #tpu.memory_space<vmem>>, %arg6: memref<16x128xf32, #tpu.memory_space<vmem>>) attributes {dimension_semantics = [#tpu.dimension_semantics<parallel>, #tpu.dimension_semantics<arbitrary>], iteration_bounds = array<i64: 1, 1>, scalar_prefetch = 0 : i64, scratch_operands = 1 : i64, tpu.core_type = #tpu.core_type<tc>, window_params = [{transform_indices = @transform_0, window_bounds = array<i64: 16, 128>}, {transform_indices = @transform_1, window_bounds = array<i64: 128, 128>}, {transform_indices = @transform_2, window_bounds = array<i64: 1, 128>}, {transform_indices = @transform_3, window_bounds = array<i64: 16, 1>}]} {
    %c0_i32 = arith.constant 0 : i32
    %0 = arith.cmpi eq, %arg1, %c0_i32 : i32
    %1 = arith.extui %0 : i1 to i32
    %c0_i32_0 = arith.constant 0 : i32
    %2 = arith.cmpi ne, %1, %c0_i32_0 : i32
    scf.if %2 {
      %cst_13 = arith.constant 0.000000e+00 : f32
      %21 = vector.broadcast %cst_13 : f32 to vector<16x128xf32>
      %c0_14 = arith.constant 0 : index
      %c0_15 = arith.constant 0 : index
      %22 = vector.load %arg6[%c0_14, %c0_15] : memref<16x128xf32, #tpu.memory_space<vmem>>, vector<16x128xf32>
      tpu.vector_store %arg6[%c0_14, %c0_15], %21 {strides = array<i32>} : memref<16x128xf32, #tpu.memory_space<vmem>>, vector<16x128xf32>,
    } else {
    }
    %c128_i32 = arith.constant 128 : i32
    %3 = arith.muli %arg1, %c128_i32 : i32
    %4 = tpu.assume_multiple %3, 128 : i32
    %c0 = arith.constant 0 : index
    %c0_1 = arith.constant 0 : index
    %5 = vector.load %arg3[%c0, %c0_1] : memref<128x128xbf16, #tpu.memory_space<vmem>>, vector<128x128xbf16>
    %c0_2 = arith.constant 0 : index
    %c0_3 = arith.constant 0 : index
    %6 = vector.load %arg2[%c0_2, %c0_3] : memref<16x128xbf16, #tpu.memory_space<vmem>>, vector<16x128xbf16>
    %cst = arith.constant dense<0.000000e+00> : vector<16x128xf32>
    %7 = tpu.matmul %6, %5, %cst {dimension_numbers = #tpu.dot_dimension_numbers<[1], [0], [0], [1], [0, 0, 1, 1], [], []>} : vector<16x128xbf16>, vector<128x128xbf16>, vector<16x128xf32> -> vector<16x128xf32>
    %c0_4 = arith.constant 0 : index
    %8 = arith.index_cast %4 : i32 to index
    %9 = vector.load %arg2[%c0_4, %8] : memref<16x128xbf16, #tpu.memory_space<vmem>>, vector<16x128xbf16>
    %10 = arith.extf %9 : vector<16x128xbf16> to vector<16x128xf32>
    %c0_5 = arith.constant 0 : index
    %c0_6 = arith.constant 0 : index
    %11 = vector.load %arg4[%c0_5, %c0_6] : memref<1x128xf32, #tpu.memory_space<vmem>>, vector<1x128xf32>
    %12 = vector.broadcast %11 : vector<1x128xf32> to vector<16x128xf32>
    %13 = arith.addf %7, %12 : vector<16x128xf32>
    %14 = arith.mulf %10, %13 : vector<16x128xf32>
    %c0_7 = arith.constant 0 : index
    %c0_8 = arith.constant 0 : index
    %15 = vector.load %arg6[%c0_7, %c0_8] : memref<16x128xf32, #tpu.memory_space<vmem>>, vector<16x128xf32>
    %16 = arith.addf %15, %14 : vector<16x128xf32>
    %c0_9 = arith.constant 0 : index
    %c0_10 = arith.constant 0 : index
    %17 = vector.load %arg6[%c0_9, %c0_10] : memref<16x128xf32, #tpu.memory_space<vmem>>, vector<16x128xf32>
    tpu.vector_store %arg6[%c0_9, %c0_10], %16 {strides = array<i32>} : memref<16x128xf32, #tpu.memory_space<vmem>>, vector<16x128xf32>,
    %c0_i32_11 = arith.constant 0 : i32
    %18 = arith.cmpi eq, %arg1, %c0_i32_11 : i32
    %19 = arith.extui %18 : i1 to i32
    %c0_i32_12 = arith.constant 0 : i32
    %20 = arith.cmpi ne, %19, %c0_i32_12 : i32
    scf.if %20 {
      %c0_13 = arith.constant 0 : index
      %c0_14 = arith.constant 0 : index
      %21 = vector.load %arg6[%c0_13, %c0_14] : memref<16x128xf32, #tpu.memory_space<vmem>>, vector<16x128xf32>
      %cst_15 = arith.constant dense<0.000000e+00> : vector<16xf32>
      %22 = vector.multi_reduction <add>, %21, %cst_15 [1] : vector<16x128xf32> to vector<16xf32>
      %23 = vector.shape_cast %22 : vector<16xf32> to vector<16x1xf32>
      %cst_16 = arith.constant 0.000000e+00 : f32
      %24 = vector.broadcast %cst_16 : f32 to vector<16x1xf32>
      %25 = arith.subf %24, %23 : vector<16x1xf32>
      %c0_17 = arith.constant 0 : index
      %c0_18 = arith.constant 0 : index
      %26 = vector.load %arg5[%c0_17, %c0_18] : memref<16x1xf32, #tpu.memory_space<vmem>>, vector<16x1xf32>
      tpu.vector_store %arg5[%c0_17, %c0_18], %25 {strides = array<i32>} : memref<16x1xf32, #tpu.memory_space<vmem>>, vector<16x1xf32>,
    } else {
    }
    return
  }
  func.func @transform_0(%arg0: i32, %arg1: i32) -> (i32, i32) {
    %c0_i32 = arith.constant 0 : i32
    %c0_i32_0 = arith.constant 0 : i32
    return %arg0, %c0_i32 : i32, i32
  }
  func.func @transform_1(%arg0: i32, %arg1: i32) -> (i32, i32) {
    %c0_i32 = arith.constant 0 : i32
    %c0_i32_0 = arith.constant 0 : i32
    return %c0_i32, %arg1 : i32, i32
  }
  func.func @transform_2(%arg0: i32, %arg1: i32) -> (i32, i32) {
    %c0_i32 = arith.constant 0 : i32
    %c0_i32_0 = arith.constant 0 : i32
    return %c0_i32, %arg1 : i32, i32
  }
  func.func @transform_3(%arg0: i32, %arg1: i32) -> (i32, i32) {
    %c0_i32 = arith.constant 0 : i32
    %c0_i32_0 = arith.constant 0 : i32
    return %arg0, %c0_i32 : i32, i32
  }
}

</mosaic_0001>

<bundles_post_ra>
// kernel: spin_glass_hamiltonian.1
= control target key start
LH: loop header
LB: loop body
LE: loop exit
PB: predicated region body
PF: predicated region fallthrough
CT: control target
= control target key end

     0   :  { %8 = vsyncpa [#allocation4], 0  ;;  %s272_s12 = smov [#allocation3]   ;;  %s315_s0 = inlined_call_operand.vmem [shape: bf16[16,128], index: 0, kind: input, shape index: {}]   ;;  %s316_s1 = inlined_call_operand.hbm [shape: bf16[128,128], index: 1, kind: input, shape index: {}]   ;;  %s317_s2 = inlined_call_operand.vmem [shape: f32[1,128], index: 2, kind: input, shape index: {}]   ;;  %s318_s3 = inlined_call_operand.vmem [shape: f32[16,1], index: 3, kind: output, shape index: {}]  }
   0x1   :  { %s16_s13 = sshll.u32 %s272_s12, 4  ;;  %s17_s13 = int_to_ptr.vmem [resolvable:$true] %s16_s13 }
   0x2   :  { %s258_s14 = scalar_lea.vmem %s17_s13, 1024  ;;  %p263_p1 = scmp.lt.s32.totalorder %s17_s13, %s17_s13 }
   0x3   :  { %p259_p0 = scmp.ne.s32.totalorder %s17_s13, %s258_s14  ;;  %p264_p2 = scmp.lt.s32.totalorder %s258_s14, %s258_s14 }
   0x5   :  { %p265_p3 = por %p264_p2, %p263_p1 }
   0x7   :  { %p266_p4 = pnand %p265_p3, %p259_p0 }
   0x9   :  { %269 = shalt.err (!%p266_p4)
}
   0xa   :  { %s273_s15 = smov 64   ;;  %s274_s16 = smov 4  }
   0xb   :  { %22 = dma.hbm_to_vmem [thread:$0]  %s316_s1, 1024, %s17_s13, [#allocation4], %s273_s15, %s273_s15, %s274_s16  }
   0xc   :  { %270 = dma.done.wait [#allocation4], 1024  }
   0xd   :  { %271 = vsyncadd [#allocation4], 4294966272  ;;  %v275_v0 = vmov 0.0   ;;  %vm276_vm0 = vmmov 0   ;;  %v241_v1 = vld [vmem:[#allocation3 + $0x38] sm:$0xff]   ;;  %v242_v2 = vld [vmem:[#allocation3 + $0x30] sm:$0xff]  }
   0xe   :  { %216 = vmatprep.subr.bf16.mxu0 %v275_v0  ;;  %232 = vmatprep.mubr.msk.bf16.mxu0 %vm276_vm0, %v275_v0  ;;  %v243_v3 = vld [vmem:[#allocation3 + $0x28] sm:$0xff]   ;;  %v244_v4 = vld [vmem:[#allocation3 + $0x20] sm:$0xff]   ;;  %v245_v5 = vld [vmem:[#allocation3 + $0x18] sm:$0xff]   ;;  %vm183_vm1 = vcmask 7168  }
   0xf   :  { %217 = vmatpush3.bf16.msra.mxu0 %v241_v1  ;;  %v246_v6 = vld [vmem:[#allocation3 + $0x10] sm:$0xff]   ;;  %v247_v7 = vld [vmem:[#allocation3 + $0x8] sm:$0xff]   ;;  %v248_v8 = vld [vmem:[#allocation3] sm:$0xff]  }
  0x10   :  { %218 = vmatprep.subr.bf16.mxu0 %v275_v0  ;;  %v249_v9 = vld [vmem:[%s315_s0] sm:$0xff]  }
  0x11   :  { %v204_v10 = vld [vmem:[%s315_s0] sm:$0xff]  }
  0x12   :  { %v193_v11 = vld [vmem:[%s317_s2] ss:$0 sm:$0xff]  ;;  %v205_v12 = vunpack.c.l.bf16 %v204_v10  ;;  %v206_v17 = vunpack.c.h.bf16 %v204_v10 }
  0x13   :  { %219 = vmatpush3.bf16.msra.mxu0 %v242_v2 }
  0x14   :  { %220 = vmatprep.subr.bf16.mxu0 %v275_v0 }
  0x17   :  { %221 = vmatpush3.bf16.msra.mxu0 %v243_v3 }
  0x18   :  { %222 = vmatprep.subr.bf16.mxu0 %v275_v0 }
  0x1b   :  { %223 = vmatpush3.bf16.msra.mxu0 %v244_v4 }
  0x1c   :  { %224 = vmatprep.subr.bf16.mxu0 %v275_v0 }
  0x1f   :  { %225 = vmatpush3.bf16.msra.mxu0 %v245_v5 }
  0x20   :  { %226 = vmatprep.subr.bf16.mxu0 %v275_v0 }
  0x23   :  { %227 = vmatpush3.bf16.msra.mxu0 %v246_v6 }
  0x24   :  { %228 = vmatprep.subr.bf16.mxu0 %v275_v0 }
  0x27   :  { %229 = vmatpush3.bf16.msra.mxu0 %v247_v7 }
  0x28   :  { %230 = vmatprep.subr.bf16.mxu0 %v275_v0 }
  0x2b   :  { %231 = vmatpush3.bf16.msra.mxu0 %v248_v8 }
  0x2e   :  { %233 = vmatmul.mubr.bf16.vlgmr.msra.gmra.mxu0 %v249_v9 }
  0xee   :  { %v157_v13 = vpop.f32.mrf.mxu0 }
  0xef   :  { %v158_v14 = vadd.f32 %v193_v11, %v157_v13 }
  0xf0   :  { %v234_v15 = vpop.f32.mrf.mxu0 }
  0xf1   :  { %v164_v16 = vmul.f32 %v205_v12, %v158_v14 }
  0xf2   :  { %v160_v18 = vpop.f32.mrf.mxu0 }
  0xf3   :  { %v161_v19 = vadd.f32 %v193_v11, %v160_v18  ;;  %177 = vadd.xlane.f32.xlu0 %v164_v16 }
  0xf4   :  { %v235_v20 = vpop.f32.mrf.mxu0 }
  0xf5   :  { %v165_v21 = vmul.f32 %v206_v17, %v161_v19 }
  0xf7   :  { %179 = vadd.xlane.f32.xlu0 %v165_v21 }
 0x17c   :  { %v178_v22 = vpop.xlane.xlu0 %177 }
 0x17d   :  { %v181_v23 = vsub.f32 0.0, %v178_v22 }
 0x17f   :  { %184 = vst.msk [vmem:[%s318_s3] sm:$0xff] %vm183_vm1, %v181_v23 }
 0x180   :  { %v180_v24 = vpop.xlane.xlu0 %179 }
 0x181   :  { %v182_v25 = vsub.f32 0.0, %v180_v24 }
 0x183   :  { %185 = vst.msk [vmem:[%s318_s3 + $0x8] sm:$0xff] %vm183_vm1, %v182_v25 }
 0x184   :  { %190 = vsyncpa [#allocation4], 1 }

</bundles_post_ra>
